<compile_context>
chip_gen: v7x
topology: tpu7x:2x2x1
jax: 0.10.0
libtpu: 0.0.40
codegen_flags: <defaults>
</compile_context>

<pallas_src>
import functools

import jax
import jax.numpy as jnp
from jax.experimental import pallas as pl
from jax.experimental.pallas import tpu as pltpu


def _per_lane_focal_loss(logits_ref, labels_ref, *, gamma, l_total, tl,
                         needs_mask):
    """Masked per-position focal loss (1, TL) for the current (C, TL) tile."""
    logits = logits_ref[...].astype(jnp.float32)               # (C, TL)

    # Numerically-stable softmax pieces over the class (sublane) axis.
    m = jnp.max(logits, axis=0, keepdims=True)                  # (1, TL)
    shifted = logits - m                                        # (C, TL)
    denom = jnp.sum(jnp.exp(shifted), axis=0, keepdims=True)    # (1, TL)
    log_denom = jnp.log(denom)                                  # (1, TL)

    # Gather the label logit per spatial position via a one-hot select.
    labels = labels_ref[...]                                    # (1, TL) int32
    row_ids = jax.lax.broadcasted_iota(jnp.int32, logits.shape, 0)
    picked = jnp.sum(jnp.where(row_ids == labels, shifted, 0.0),
                     axis=0, keepdims=True)                     # (1, TL)

    log_p = picked - log_denom            # log_softmax at the label
    p = jnp.exp(log_p)                    # softmax at the label
    one_minus = 1.0 - p
    factor = jnp.ones_like(one_minus)
    for _ in range(gamma):                # gamma is a static Python int
        factor = factor * one_minus
    loss = -(factor * log_p)              # (1, TL)

    if needs_mask:
        # Partial last tile along L: zero the out-of-range lanes.  The
        # where-select is NaN-safe even if the out-of-bounds input is garbage.
        li = pl.program_id(1)
        lane = jax.lax.broadcasted_iota(jnp.int32, loss.shape, 1)
        loss = jnp.where(li * tl + lane < l_total, loss, 0.0)
    return loss


def _focal_elem_kernel(logits_ref, labels_ref, loss_ref, **kw):
    loss_ref[...] = _per_lane_focal_loss(logits_ref, labels_ref, **kw)


def _focal_sum_kernel(logits_ref, labels_ref, acc_ref, **kw):
    # Accumulate a per-batch partial sum across the (arbitrary) L axis.
    @pl.when(pl.program_id(1) == 0)
    def _():
        acc_ref[...] = jnp.zeros_like(acc_ref)

    loss = _per_lane_focal_loss(logits_ref, labels_ref, **kw)
    acc_ref[...] += jnp.sum(loss, axis=-1, keepdims=True)       # (1, 1)


def _pick_tile(l, c, in_itemsize, max_lanes, vmem_budget_bytes):
    """Largest 128-multiple spatial tile that fits the VMEM budget."""
    l128 = pl.cdiv(l, 128) * 128
    # Per-lane VMEM bytes: double-buffered (C,TL) logits + (1,TL) labels input
    # blocks, the per-element output block, ~5 live (C,TL) f32 temporaries and
    # a handful of (1,TL) temporaries.
    bytes_per_lane = 2 * c * in_itemsize + 5 * c * 4 + 16 * 4
    cap = max(128, (vmem_budget_bytes // bytes_per_lane) // 128 * 128)
    return max(128, min(max_lanes, cap, l128))


def softmax_focal_loss(logits, labels, gamma=2, reduce=True,
                       max_lanes=65536, vmem_budget_bytes=20 << 20):
    """logits: (N, C, H, W) float, labels: (N, H, W) int -> focal NLL loss."""
    n, c, h, w = logits.shape
    l = h * w

    # Pure views: spatial (H*W) stays contiguous on the last (lane) axis.
    # Keep the logits dtype (bf16 inputs are DMA'd as bf16; cast is in-kernel).
    logits3 = logits.reshape(n, c, l)
    labels3 = labels.reshape(n, 1, l).astype(jnp.int32)

    tl = _pick_tile(l, c, logits.dtype.itemsize, max_lanes, vmem_budget_bytes)
    num_l_tiles = pl.cdiv(l, tl)
    if not reduce and n == 1 and num_l_tiles == 1 and l > 256:
        # v7x has 2 TensorCores: keep the parallel grid at >= 2 steps.
        tl = max(128, pl.cdiv(pl.cdiv(l, 2), 128) * 128)
        num_l_tiles = pl.cdiv(l, tl)
    needs_mask = (l % tl) != 0

    kw = dict(gamma=int(gamma), l_total=l, tl=tl, needs_mask=needs_mask)
    in_specs = [
        # (C, TL) logits tile: batch squeezed, full class axis, lane-dense L.
        pl.BlockSpec((None, c, tl), lambda bi, li: (bi, 0, li)),
        # (1, TL) lane-dense label row.
        pl.BlockSpec((None, 1, tl), lambda bi, li: (bi, 0, li)),
    ]

    if reduce:
        # Fused mean: only N partial sums ever touch HBM.
        partial_sums = pl.pallas_call(
            functools.partial(_focal_sum_kernel, **kw),
            out_shape=jax.ShapeDtypeStruct((n, 1, 1), jnp.float32),
            grid_spec=pltpu.PrefetchScalarGridSpec(
                num_scalar_prefetch=0,
                grid=(n, num_l_tiles),
                in_specs=in_specs,
                out_specs=pl.BlockSpec((None, 1, 1), lambda bi, li: (bi, 0, 0)),
            ),
            compiler_params=pltpu.CompilerParams(
                dimension_semantics=("parallel", "arbitrary"),
                vmem_limit_bytes=32 << 20),
        )(logits3, labels3)
        return jnp.sum(partial_sums) / (n * l)                  # NLLLoss mean

    per_elem = pl.pallas_call(
        functools.partial(_focal_elem_kernel, **kw),
        out_shape=jax.ShapeDtypeStruct((n, 1, l), jnp.float32),
        grid_spec=pltpu.PrefetchScalarGridSpec(
            num_scalar_prefetch=0,
            grid=(n, num_l_tiles),
            in_specs=in_specs,
            out_specs=pl.BlockSpec((None, 1, tl), lambda bi, li: (bi, 0, li)),
        ),
        compiler_params=pltpu.CompilerParams(
            dimension_semantics=("parallel", "parallel"),
            vmem_limit_bytes=32 << 20),
    )(logits3, labels3)
    return per_elem.reshape(n, h, w)                            # (N, H, W)


if __name__ == "__main__":
    key = jax.random.PRNGKey(0)
    k1, k2 = jax.random.split(key)

    N, C, H, W = 2, 4, 16, 16
    logits = jax.random.normal(k1, (N, C, H, W), dtype=jnp.float32)
    labels = jax.random.randint(k2, (N, H, W), 0, C, dtype=jnp.int32)

    loss_mean = softmax_focal_loss(logits, labels, gamma=2, reduce=True)
    loss_elem = softmax_focal_loss(logits, labels, gamma=2, reduce=False)
    jax.block_until_ready(loss_mean)
    jax.block_until_ready(loss_elem)

    # Pure-JAX reference check.
    log_sm = jax.nn.log_softmax(logits, axis=1)
    sm = jax.nn.softmax(logits, axis=1)
    weighted = (1.0 - sm) ** 2 * log_sm
    gathered = jnp.take_along_axis(weighted, labels[:, None, :, :], axis=1)[:, 0]
    ref_elem = -gathered
    ref_mean = jnp.mean(ref_elem)
    assert jnp.allclose(loss_mean, ref_mean, atol=1e-5), (loss_mean, ref_mean)
    assert jnp.allclose(loss_elem, ref_elem, atol=1e-5)

    print("KERNEL_OK")
</pallas_src>

<mosaic_0001>
module attributes {stable_mosaic.version = 11 : i64} {
  func.func @_focal_sum_kernel(%arg0: i32, %arg1: i32, %arg2: memref<1x4x256xf32, #tpu.memory_space<vmem>>, %arg3: memref<1x1x256xi32, #tpu.memory_space<vmem>>, %arg4: memref<1x1x1xf32, #tpu.memory_space<vmem>>) attributes {dimension_semantics = [#tpu.dimension_semantics<parallel>, #tpu.dimension_semantics<arbitrary>], iteration_bounds = array<i64: 2, 1>, scalar_prefetch = 0 : i64, scratch_operands = 0 : i64, tpu.core_type = #tpu.core_type<tc>, window_params = [{transform_indices = @transform_0, window_bounds = array<i64: 1, 4, 256>}, {transform_indices = @transform_1, window_bounds = array<i64: 1, 1, 256>}, {transform_indices = @transform_2, window_bounds = array<i64: 1, 1, 1>}]} {
    %c0_i32 = arith.constant 0 : i32
    %0 = arith.cmpi eq, %arg1, %c0_i32 : i32
    %1 = arith.extui %0 : i1 to i32
    %c0_i32_0 = arith.constant 0 : i32
    %2 = arith.cmpi ne, %1, %c0_i32_0 : i32
    scf.if %2 {
      %cst_19 = arith.constant 0.000000e+00 : f32
      %40 = vector.broadcast %cst_19 : f32 to vector<1x1xf32>
      %c0_20 = arith.constant 0 : index
      %c0_21 = arith.constant 0 : index
      %c0_22 = arith.constant 0 : index
      %41 = vector.load %arg4[%c0_20, %c0_21, %c0_22] : memref<1x1x1xf32, #tpu.memory_space<vmem>>, vector<1x1x1xf32>
      %42 = vector.shape_cast %41 : vector<1x1x1xf32> to vector<1x1xf32>
      %43 = vector.shape_cast %40 : vector<1x1xf32> to vector<1x1x1xf32>
      tpu.vector_store %arg4[%c0_20, %c0_21, %c0_22], %43 {strides = array<i32>} : memref<1x1x1xf32, #tpu.memory_space<vmem>>, vector<1x1x1xf32>,
    } else {
    }
    %c0 = arith.constant 0 : index
    %c0_1 = arith.constant 0 : index
    %c0_2 = arith.constant 0 : index
    %3 = vector.load %arg2[%c0, %c0_1, %c0_2] : memref<1x4x256xf32, #tpu.memory_space<vmem>>, vector<1x4x256xf32>
    %4 = vector.shape_cast %3 : vector<1x4x256xf32> to vector<4x256xf32>
    %cst = arith.constant dense<0xFF800000> : vector<256xf32>
    %5 = vector.multi_reduction <maximumf>, %4, %cst [0] : vector<4x256xf32> to vector<256xf32>
    %6 = vector.shape_cast %5 : vector<256xf32> to vector<1x256xf32>
    %7 = vector.broadcast %6 : vector<1x256xf32> to vector<4x256xf32>
    %8 = arith.subf %4, %7 : vector<4x256xf32>
    %9 = math.exp %8 : vector<4x256xf32>
    %cst_3 = arith.constant dense<0.000000e+00> : vector<256xf32>
    %10 = vector.multi_reduction <add>, %9, %cst_3 [0] : vector<4x256xf32> to vector<256xf32>
    %11 = vector.shape_cast %10 : vector<256xf32> to vector<1x256xf32>
    %12 = math.log %11 : vector<1x256xf32>
    %c0_4 = arith.constant 0 : index
    %c0_5 = arith.constant 0 : index
    %c0_6 = arith.constant 0 : index
    %13 = vector.load %arg3[%c0_4, %c0_5, %c0_6] : memref<1x1x256xi32, #tpu.memory_space<vmem>>, vector<1x1x256xi32>
    %14 = vector.shape_cast %13 : vector<1x1x256xi32> to vector<1x256xi32>
    %15 = tpu.iota {dimensions = array<i32: 0>} : vector<4x256xi32>
    %16 = vector.broadcast %14 : vector<1x256xi32> to vector<4x256xi32>
    %17 = arith.cmpi eq, %15, %16 : vector<4x256xi32>
    %cst_7 = arith.constant 0.000000e+00 : f32
    %18 = vector.broadcast %cst_7 : f32 to vector<4x256xf32>
    %19 = arith.select %17, %8, %18 : vector<4x256xi1>, vector<4x256xf32>
    %cst_8 = arith.constant dense<0.000000e+00> : vector<256xf32>
    %20 = vector.multi_reduction <add>, %19, %cst_8 [0] : vector<4x256xf32> to vector<256xf32>
    %21 = vector.shape_cast %20 : vector<256xf32> to vector<1x256xf32>
    %22 = arith.subf %21, %12 : vector<1x256xf32>
    %23 = math.exp %22 : vector<1x256xf32>
    %cst_9 = arith.constant 1.000000e+00 : f32
    %24 = vector.broadcast %cst_9 : f32 to vector<1x256xf32>
    %25 = arith.subf %24, %23 : vector<1x256xf32>
    %cst_10 = arith.constant 1.000000e+00 : f32
    %26 = vector.broadcast %cst_10 : f32 to vector<1x256xf32>
    %27 = arith.mulf %26, %25 : vector<1x256xf32>
    %28 = arith.mulf %27, %25 : vector<1x256xf32>
    %29 = arith.mulf %28, %22 : vector<1x256xf32>
    %cst_11 = arith.constant 0.000000e+00 : f32
    %30 = vector.broadcast %cst_11 : f32 to vector<1x256xf32>
    %31 = arith.subf %30, %29 : vector<1x256xf32>
    %c0_12 = arith.constant 0 : index
    %c0_13 = arith.constant 0 : index
    %c0_14 = arith.constant 0 : index
    %32 = vector.load %arg4[%c0_12, %c0_13, %c0_14] : memref<1x1x1xf32, #tpu.memory_space<vmem>>, vector<1x1x1xf32>
    %33 = vector.shape_cast %32 : vector<1x1x1xf32> to vector<1x1xf32>
    %cst_15 = arith.constant dense<0.000000e+00> : vector<1xf32>
    %34 = vector.multi_reduction <add>, %31, %cst_15 [1] : vector<1x256xf32> to vector<1xf32>
    %35 = vector.shape_cast %34 : vector<1xf32> to vector<1x1xf32>
    %36 = arith.addf %33, %35 : vector<1x1xf32>
    %c0_16 = arith.constant 0 : index
    %c0_17 = arith.constant 0 : index
    %c0_18 = arith.constant 0 : index
    %37 = vector.load %arg4[%c0_16, %c0_17, %c0_18] : memref<1x1x1xf32, #tpu.memory_space<vmem>>, vector<1x1x1xf32>
    %38 = vector.shape_cast %37 : vector<1x1x1xf32> to vector<1x1xf32>
    %39 = vector.shape_cast %36 : vector<1x1xf32> to vector<1x1x1xf32>
    tpu.vector_store %arg4[%c0_16, %c0_17, %c0_18], %39 {strides = array<i32>} : memref<1x1x1xf32, #tpu.memory_space<vmem>>, vector<1x1x1xf32>,
    return
  }
  func.func @transform_0(%arg0: i32, %arg1: i32) -> (i32, i32, i32) {
    %c0_i32 = arith.constant 0 : i32
    %c0_i32_0 = arith.constant 0 : i32
    return %arg0, %c0_i32, %arg1 : i32, i32, i32
  }
  func.func @transform_1(%arg0: i32, %arg1: i32) -> (i32, i32, i32) {
    %c0_i32 = arith.constant 0 : i32
    %c0_i32_0 = arith.constant 0 : i32
    return %arg0, %c0_i32, %arg1 : i32, i32, i32
  }
  func.func @transform_2(%arg0: i32, %arg1: i32) -> (i32, i32, i32) {
    %c0_i32 = arith.constant 0 : i32
    %c0_i32_0 = arith.constant 0 : i32
    %c0_i32_1 = arith.constant 0 : i32
    return %arg0, %c0_i32, %c0_i32_0 : i32, i32, i32
  }
}

</mosaic_0001>

<bundles_post_ra>
// kernel: tpu_custom_call.1
= control target key start
LH: loop header
LB: loop body
LE: loop exit
PB: predicated region body
PF: predicated region fallthrough
CT: control target
= control target key end

     0   :  { %7 = vsyncpa [#allocation3], 0  ;;  %s825_s0 = inlined_call_operand.hbm [shape: f32[2,4,256], index: 0, kind: input, shape index: {}]   ;;  %s826_s1 = inlined_call_operand.hbm [shape: s32[2,1,256], index: 1, kind: input, shape index: {}]   ;;  %s827_s2 = inlined_call_operand.vmem [shape: f32[2,1,1], index: 2, kind: output, shape index: {}]  }
   0x1   :  { %9 = vsyncpa [#allocation3 + $0x1], 0 }
   0x2   :  { %10 = vsyncpa [#allocation5], 0 }
   0x3   :  { %12 = vsyncpa [#allocation5 + $0x1], 0  ;;  %s643_s9 = smov 0   ;;  %s645_s10 = smov 0  }
   0x4   :  { %s647_s11 = smov 0   ;;  %s649_s12 = smov 0  }
   0x5   :  { %s651_s13 = smov 0   ;;  %s653_s14 = smov 0  }
   0x6 LB: > { %s420_s15 = sadd.s32 4294967295, %s623_s14   ;;  %s30_s16 = sadd.s32 1, %s619_s13  ;;  %s623_s14 = sphi %s653_s14, %s18_s14   ;;  %s619_s13 = sphi %s651_s13, %s841_s13   ;;  %s615_s12 = sphi %s649_s12, %s840_s12   ;;  %s611_s11 = sphi %s647_s11, %s839_s11   ;;  %s607_s10 = sphi %s645_s10, %s838_s10   ;;  %s603_s9 = sphi %s643_s9, %s837_s9  }
   0x7   : > { %p32_p0 = scmp.ge.s32.totalorder %s30_s16, 2  ;;  %s39_s17 = sadd.s32 1, %s611_s11 }
   0x8   : > { %p46_p1 = scmp.ne.s32.totalorder %s611_s11, %s607_s10  ;;  %p47_p2 = scmp.eq.s32.totalorder %s623_s14, 0 }
   0x9   : > { %s843_s16 = smov (%p32_p0, %s30_s16), 0  ;;  %p52_p4 = scmp.ne.s32.totalorder %s607_s10, %s603_s9 }
   0xa   : > { %p679_p3 = por %p47_p2, %p46_p1  ;;  %s34_s19 = ssub.s32 %s619_s13, %s843_s16 }
   0xb   : > { %p53_p5 = scmp.eq.s32.totalorder %s420_s15, 0  ;;  %p37_p6 = scmp.eq.s32.totalorder %s34_s19, 0 }
   0xc   : > { %p448_p8 = scmp.lt.s32.totalorder %s623_s14, 2  ;;  %s695_s22 = sand.u32 1, %s611_s11  }
   0xd   : > { %p686_p7 = por %p53_p5, %p52_p4  ;;  %s435_s23 = sshll.u32 %s619_s13, 7 }
   0xe   : > { %s692_s21 = scalar_select %p37_p6, %s611_s11, %s39_s17  }
   0xf   : > { %s830_s20 = scalar_select %p686_p7, 1, 0 }
  0x10   : > { %s424_s24 = sshll.u32 %s695_s22, 3  ;;  %s702_s27 = scalar_lea.hbm %s825_s0, %s435_s23 }
  0x11   : > { %s134_s28 = scalar_lea.vmem [#allocation2], %s424_s24  ;;  %p706_p9 = pnand %p448_p8, %p679_p3 }
  0x12   : > { %s144_s29 = sshll.u32 %s134_s28, 4  ;;  %s131_s3 = scalar_lea.sflag [#allocation3], %s695_s22  ;;  %s710_s29 = int_to_ptr.vmem [resolvable:$true] %s144_s29 }
  0x13   : > { %s509_s4 = scalar_lea.hbm %s702_s27, 128  ;;  %p511_p13 = pneg %p706_p9 }
  0x14   : > { %p510_p12 = scmp.ne.s32.totalorder %s702_s27, %s509_s4  ;;  %s514_s7 = scalar_lea.hbm %s825_s0, 256 }
  0x15   : > { %p515_p2 = scmp.lt.u32.totalorder %s702_s27, %s825_s0  ;;  %p516_p3 = scmp.lt.u32.totalorder %s514_s7, %s509_s4 }
  0x16   : > { %p512_p0 = pnand %p511_p13, %p510_p12  ;;  %p518_p5 = scmp.lt.u32.totalorder %s509_s4, %s702_s27 }
  0x17   : > { %p517_p4 = por %p516_p3, %p515_p2 }
  0x18   : > { %p513_p1 = pneg %p512_p0 }
  0x19   : > { %p519_p6 = por %p518_p5, %p517_p4 }
  0x1b   : > { %p520_p8 = pnand %p519_p6, %p513_p1 }
  0x1d   : > { %523 = shalt.err (!%p520_p8)
}
  0x1e   : > { %s524_s15 = scalar_lea.vmem %s710_s29, 128  ;;  %s625_s17 = smov [#allocation2]  }
  0x1f   : > { %p525_p12 = scmp.ne.s32.totalorder %s710_s29, %s524_s15  ;;  %s529_s18 = sshll.u32 %s625_s17, 4  ;;  %s530_s18 = int_to_ptr.vmem [resolvable:$false] %s529_s18 }
  0x20   : > { %s531_s19 = scalar_lea.vmem %s530_s18, 256  ;;  %p532_p11 = scmp.lt.s32.totalorder %s710_s29, %s530_s18 }
  0x21   : > { %p527_p0 = pnand %p525_p12, %p511_p13  ;;  %p533_p2 = scmp.lt.s32.totalorder %s531_s19, %s524_s15 }
  0x23   : > { %p528_p10 = pneg %p527_p0  ;;  %p534_p3 = por %p533_p2, %p532_p11 }
  0x25   : > { %p535_p4 = pnand %p534_p3, %p528_p10 }
  0x27   : > { %538 = shalt.err (!%p535_p4)
}
  0x28   : > { %444 = dma.hbm_to_vmem [thread:$0]  (!%p706_p9), %s702_s27, 128, %s710_s29, %s131_s3  }
  0x29   : > { %p832_p1 = scmp.lt.s32.totalorder %s623_s14, 3  ;;  %p833_p5 = scmp.ge.s32.totalorder %s623_s14, 1 }
  0x2a   : > { %s427_s24 = sshll.u32 %s695_s22, 1  ;;  %s436_s25 = sshll.u32 %s619_s13, 5 }
  0x2b   : > { %p744_p6 = pnand %p833_p5, %p832_p1  ;;  %s753_s4 = scalar_lea.hbm %s826_s1, %s436_s25 }
  0x2c   : > { %s155_s5 = scalar_lea.vmem [#allocation4], %s427_s24  ;;  %s152_s27 = scalar_lea.sflag [#allocation5], %s695_s22 }
  0x2d   : > { %s834_s23 = scalar_select %p744_p6, 1, 0 }
  0x2e   : > { %s165_s6 = sshll.u32 %s155_s5, 4  ;;  %s539_s29 = scalar_lea.hbm %s753_s4, 32  ;;  %s166_s6 = int_to_ptr.vmem [resolvable:$true] %s165_s6 }
  0x2f   : > { %p540_p10 = scmp.ne.s32.totalorder %s753_s4, %s539_s29  ;;  %s544_s8 = scalar_lea.hbm %s826_s1, 64 }
  0x30   : > { %p545_p12 = scmp.lt.u32.totalorder %s753_s4, %s826_s1  ;;  %p546_p0 = scmp.lt.u32.totalorder %s544_s8, %s539_s29 }
  0x31   : > { %p542_p11 = pnand %p540_p10, %p511_p13  ;;  %p548_p3 = scmp.lt.u32.totalorder %s539_s29, %s753_s4 }
  0x32   : > { %p547_p2 = por %p546_p0, %p545_p12 }
  0x33   : > { %p543_p8 = pneg %p542_p11 }
  0x34   : > { %p549_p4 = por %p548_p3, %p547_p2 }
  0x36   : > { %p550_p1 = pnand %p549_p4, %p543_p8 }
  0x38   : > { %553 = shalt.err (!%p550_p1)
}
  0x39   : > { %s554_s22 = scalar_lea.vmem %s166_s6, 32  ;;  %s626_s17 = smov [#allocation4]  }
  0x3a   : > { %p555_p5 = scmp.ne.s32.totalorder %s166_s6, %s554_s22  ;;  %s559_s18 = sshll.u32 %s626_s17, 4  ;;  %s560_s18 = int_to_ptr.vmem [resolvable:$false] %s559_s18 }
  0x3b   : > { %s561_s19 = scalar_lea.vmem %s560_s18, 64  ;;  %p562_p7 = scmp.lt.s32.totalorder %s166_s6, %s560_s18 }
  0x3c   : > { %p557_p10 = pnand %p555_p5, %p511_p13  ;;  %p563_p6 = scmp.lt.s32.totalorder %s561_s19, %s554_s22 }
  0x3e   : > { %p558_p11 = pneg %p557_p10  ;;  %p564_p0 = por %p563_p6, %p562_p7 }
  0x40   : > { %p565_p12 = pnand %p564_p0, %p558_p11 }
  0x42   : > { %568 = shalt.err (!%p565_p12)
}
  0x43   : > { %447 = dma.hbm_to_vmem [thread:$0]  (!%p706_p9), %s753_s4, 32, %s166_s6, %s152_s27  }
  0x44   : > { %p835_p8 = scmp.ne.s32.totalorder %s834_s23, 0 }
  0x45   : > { %s176_s24 = sand.u32 (!%p835_p8), 1, %s607_s10   ;;  %p836_p13 = scmp.ne.s32.totalorder (!%p835_p8), %s830_s20, 0 }
  0x46   : > { %174 = sbr.rel (%p835_p8) target bundleno = 312 (0x138), region = 28  ;;  %s431_s25 = sshll.u32 (!%p835_p8), %s176_s24, 3 }
  0x47   : > { %s177_s26 = scalar_lea.sflag (!%p835_p8), [#allocation3], %s176_s24  ;;  %s180_s28 = scalar_lea.vmem (!%p835_p8), [#allocation2], %s431_s25 }
  0x4d   : > { %594 = dma.done.wait (%p836_p13), %s177_s26, 128  }
  0x4e   : > { %596 = vsyncadd (%p836_p13), %s177_s26, 4294967168  ;;  %s432_s5 = sshll.u32 %s176_s24, 1  ;;  %s186_s29 = scalar_lea.sflag [#allocation5], %s176_s24 }
  0x4f   : > { %s782_s30 = scalar_lea.vmem [#allocation4], %s432_s5 }
  0x50   : > { %598 = dma.done.wait (%p836_p13), %s186_s29, 32  }
  0x51   : > { %600 = vsyncadd (%p836_p13), %s186_s29, 4294967264  ;;  %p215_p7 = scmp.lt.s32.totalorder %s615_s12, 1  ;;  %vm222_vm0 = vcmask 0   ;;  %vm228_vm1 = vcmask 1043456   ;;  %v627_v0 = vmov 0.0   ;;  %v224_v1 = vld [vmem:[%s180_s28] sm:$0xff]  ;;  %v272_v14 = vlaneseq }
  0x52   : > { %v226_v2 = vcombine.high %v224_v1, %v224_v1  ;;  %v229_v3 = vsel %vm228_vm1, %v224_v1, -inf  ;;  %v271_v22 = vld [vmem:[%s782_s30] sm:$0x3] }
  0x53   : > { %s845_s12 = smov (!%p215_p7, %s615_s12), 1  ;;  %v230_v4 = vrot.slane %v229_v3, 4  ;;  %v273_v18 = vshrl.u32 %v272_v14, 7 }
  0x54   : > { %s793_s6 = scalar_lea.vmem %s827_s2, %s845_s12  ;;  %v236_v5 = vsel %vm228_vm1, %v226_v2, -inf }
  0x55   : > { %223 = vst.msk [vmem:[%s793_s6] sm:$0x1] %vm222_vm0, %v627_v0  ;;  %v231_v6 = vmax.f32 %v229_v3, %v230_v4  ;;  %v237_v7 = vrot.slane %v236_v5, 4  ;;  %v276_v21 = vsub.s32 0, %v273_v18  ;;  %v280_v24 = vsub.s32 1, %v273_v18 }
  0x57   : > { %v232_v8 = vrot.slane %v231_v6, 2  ;;  %v238_v9 = vmax.f32 %v236_v5, %v237_v7  ;;  %v277_v25 = vrot.slane %v271_v22, %v276_v21  ;;  %v281_v26 = vrot.slane %v271_v22, %v280_v24 }
  0x59   : > { %v233_v10 = vmax.f32 %v231_v6, %v232_v8  ;;  %v239_v11 = vrot.slane %v238_v9, 2  ;;  %vm282_vm2 = vcmp.eq.s32.totalorder %v273_v18, %v277_v25  ;;  %vm283_vm3 = vcmp.eq.s32.totalorder %v273_v18, %v281_v26 }
  0x5b   : > { %v234_v12 = vrot.slane %v233_v10, 1  ;;  %v240_v13 = vmax.f32 %v238_v9, %v239_v11 }
  0x5d   : > { %v235_v15 = vmax.f32 %v233_v10, %v234_v12  ;;  %v241_v16 = vrot.slane %v240_v13, 1 }
  0x5f   : > { %v242_v17 = vmax.f32 %v240_v13, %v241_v16 }
  0x61   : > { %v245_v19 = vcombine.low %v235_v15, %v242_v17  ;;  %v317_v15 = vld [vmem:[%s793_s6] sm:$0x1] }
  0x63   : > { %v247_v20 = vsub.f32 %v224_v1, %v245_v19 }
  0x65   : > { %v248_v23 = vmul.f32 1.442695, %v247_v20  ;;  %v285_v27 = vcombine.high %v247_v20, %v247_v20  ;;  %v287_v28 = vsel %vm282_vm2, %v247_v20, 0.0 }
  0x66   : > { %v289_v31 = vsel %vm228_vm1, %v287_v28, 0.0 }
  0x67   : > { %499 = vpow2.f32 %v248_v23  ;;  %v288_v29 = vsel %vm283_vm3, %v285_v27, 0.0  ;;  %v290_v37 = vrot.slane %v289_v31, 4 }
  0x68   : > { %v296_v35 = vsel %vm228_vm1, %v288_v29, 0.0 }
  0x69   : > { %v297_v40 = vrot.slane %v296_v35, 4  ;;  %v291_v43 = vadd.f32 %v290_v37, %v289_v31 }
  0x6b   : > { %v298_v46 = vadd.f32 %v297_v40, %v296_v35  ;;  %v292_v49 = vrot.slane %v291_v43, 2 }
  0x6d   : > { %v299_v52 = vrot.slane %v298_v46, 2  ;;  %v293_v54 = vadd.f32 %v292_v49, %v291_v43 }
  0x6f   : > { %v300_v55 = vadd.f32 %v299_v52, %v298_v46  ;;  %v294_v56 = vrot.slane %v293_v54, 1 }
  0x71   : > { %v500_v30 = vpop.eup %499  ;;  %v301_v57 = vrot.slane %v300_v55, 1  ;;  %v295_v58 = vadd.f32 %v294_v56, %v293_v54 }
  0x72   : > { %v251_v32 = vcombine.high %v500_v30, %v500_v30  ;;  %v253_v33 = vsel %vm228_vm1, %v500_v30, 0.0 }
  0x73   : > { %v254_v34 = vrot.slane %v253_v33, 4  ;;  %v302_v61 = vadd.f32 %v301_v57, %v300_v55 }
  0x74   : > { %v260_v36 = vsel %vm228_vm1, %v251_v32, 0.0 }
  0x75   : > { %v255_v38 = vadd.f32 %v254_v34, %v253_v33  ;;  %v261_v39 = vrot.slane %v260_v36, 4 }
  0x77   : > { %v256_v41 = vrot.slane %v255_v38, 2  ;;  %v262_v42 = vadd.f32 %v261_v39, %v260_v36 }
  0x79   : > { %v257_v44 = vadd.f32 %v256_v41, %v255_v38  ;;  %v263_v45 = vrot.slane %v262_v42, 2 }
  0x7b   : > { %v258_v47 = vrot.slane %v257_v44, 1  ;;  %v264_v48 = vadd.f32 %v263_v45, %v262_v42 }
  0x7d   : > { %v259_v50 = vadd.f32 %v258_v47, %v257_v44  ;;  %v265_v51 = vrot.slane %v264_v48, 1 }
  0x7f   : > { %v266_v53 = vadd.f32 %v265_v51, %v264_v48  ;;  %501 = vlog2.f32 %v259_v50 }
  0x81   : > { %503 = vlog2.f32 %v266_v53 }
  0x89   : > { %v502_v59 = vpop.eup %501 }
  0x8a   : > { %v268_v60 = vmul.f32 0.6931472, %v502_v59 }
  0x8b   : > { %v504_v62 = vpop.eup %503 }
  0x8c   : > { %v270_v63 = vmul.f32 0.6931472, %v504_v62  ;;  %v303_v0 = vsub.f32 %v295_v58, %v268_v60 }
  0x8e   : > { %v304_v1 = vsub.f32 %v302_v61, %v270_v63  ;;  %v305_v2 = vmul.f32 1.442695, %v303_v0 }
  0x90   : > { %505 = vpow2.f32 %v305_v2  ;;  %v307_v3 = vmul.f32 1.442695, %v304_v1 }
  0x92   : > { %507 = vpow2.f32 %v307_v3 }
  0x9a   : > { %v506_v4 = vpop.eup %505 }
  0x9b   : > { %v309_v5 = vsub.f32 1.0, %v506_v4 }
  0x9c   : > { %v508_v6 = vpop.eup %507 }
  0x9d   : > { %v310_v7 = vsub.f32 1.0, %v508_v6  ;;  %v311_v8 = vmul.f32 %v309_v5, %v309_v5 }
  0x9f   : > { %v312_v9 = vmul.f32 %v310_v7, %v310_v7  ;;  %v313_v10 = vmul.f32 %v311_v8, %v303_v0 }
  0xa1   : > { %v314_v11 = vmul.f32 %v312_v9, %v304_v1  ;;  %v315_v12 = vsub.f32 0.0, %v313_v10 }
  0xa3   : > { %v316_v13 = vsub.f32 0.0, %v314_v11 }
  0xa5   : > { %v318_v14 = vadd.f32 %v316_v13, %v315_v12 }
  0xa7   : > { %319 = vadd.xlane.f32.xlu0 %v318_v14 }
 0x134   : > { %v320_v16 = vpop.xlane.xlu0 %319 }
 0x135   : > { %v321_v17 = vadd.f32 %v320_v16, %v317_v15 }
 0x137   : > { %323 = vst.msk [vmem:[%s793_s6] sm:$0x1] %vm222_vm0, %v321_v17 }
 0x138 PF: > { %s18_s14 = sadd.s32 1, %s623_s14   ;;  %s837_s9 = smov %s607_s10 }
 0x139   : > { %p15_p9 = scmp.ge.s32.totalorder %s18_s14, 4   ;;  %s838_s10 = smov %s611_s11 }
 0x13a   : > { %s839_s11 = smov %s692_s21  ;;  %s840_s12 = smov %s619_s13 }
 0x13b   : > { %s841_s13 = smov %s843_s16  ;;  %17 = sbr.rel (!%p15_p9) target bundleno = 6 (0x6), region = 85 }
 0x142   :  { %341 = vsyncpa [#allocation3], 1 }
 0x143   :  { %343 = vsyncpa [#allocation3 + $0x1], 1 }
 0x144   :  { %344 = vsyncpa [#allocation5], 1 }
 0x145   :  { %346 = vsyncpa [#allocation5 + $0x1], 1 }

</bundles_post_ra>
